<compile_context>
chip_gen: v7x
topology: tpu7x:2x2x1
jax: 0.10.0
libtpu: 0.0.40
codegen_flags: <defaults>
</compile_context>

<pallas_src>
import functools
import math

import jax
import jax.numpy as jnp
from jax import lax
from jax.experimental import pallas as pl
from jax.experimental.pallas import tpu as pltpu


def _t2v_kernel(x_ref, w_ref, b_ref, o_ref, *, out_dim, lane_group, use_mxu):
    # x_ref: (TM, r)        f32   raw inputs (unscaled)
    # w_ref: (r, lanes)     f32   block-diagonal weight expansion
    # b_ref: (1, lanes)     f32   bias tiled per lane group
    # o_ref: (TM, lanes)          lane-dense output block
    xs = x_ref[...] / jnp.float32(47.0)          # tiny tile -> negligible VALU
    if use_mxu:
        # Expand each x value across its out_dim-wide lane group via a
        # block-diagonal matmul (accumulation depth 1, HIGHEST keeps ~f32
        # accuracy of the product; MXU is otherwise idle here).
        z = jnp.dot(xs, w_ref[...], preferred_element_type=jnp.float32,
                    precision=lax.Precision.HIGHEST) + b_ref[...]
    else:
        # r == 1: plain lane-broadcast affine on the VPU (exact f32 path).
        z = xs * w_ref[...] + b_ref[...]

    lanes = o_ref.shape[-1]
    # Tiny (1, lanes) mask; jnp.where broadcasts it over the block.  The last
    # real feature of each lane group is the linear term, the rest use sin.
    k = lax.broadcasted_iota(jnp.int32, (1, lanes), 1)
    is_linear = (k % lane_group) == (out_dim - 1)
    o_ref[...] = jnp.where(is_linear, z, jnp.sin(z)).astype(o_ref.dtype)


def _choose_layout(out_dim):
    """Pick the lane-dense packing: r rows per lane group, lanes = r*group."""
    g = math.gcd(out_dim, 128)
    r_min = 128 // g                      # smallest r with r*out_dim % 128 == 0
    if r_min <= 64:
        base = r_min * out_dim            # smallest lane-dense group width
        mult = max(1, 512 // base)        # widen toward ~512 lanes
        r = r_min * mult
        feat_pad = 0
    else:
        # out_dim has a large coprime factor: pad the feature dim instead
        # (rare; still a full >=128-lane unmasked store path).
        r = 1
        feat_pad = (-out_dim) % 128
    lane_group = out_dim + feat_pad
    lanes = r * lane_group
    return r, lanes, lane_group, feat_pad


def origin_time2vec(x, w, b, w0, b0, *, block_bytes=6 * 1024 * 1024,
                    out_dtype=jnp.float32):
    """x: (B, L); params have the nn.Module shapes (in_features=1).
    Returns (B, L, out_dim) -- identical to the torch forward (out_dtype=f32)."""
    B, L = x.shape
    out_dim = w.shape[-1] + 1
    n = B * L

    r, lanes, lane_group, feat_pad = _choose_layout(out_dim)

    # Flatten (w, w0) / (b, b0) into (out_dim,) vectors, torch concat order.
    w_all = jnp.concatenate([w.reshape(-1), w0.reshape(-1)]).astype(jnp.float32)
    b_all = jnp.concatenate([b.reshape(-1), b0.reshape(-1)]).astype(jnp.float32)
    if feat_pad:
        w_all = jnp.pad(w_all, (0, feat_pad))
        b_all = jnp.pad(b_all, (0, feat_pad))

    # Block-diagonal expansion matrix: wsel[j, j*group + k] = w_all[k].
    eye_r = jnp.eye(r, dtype=jnp.float32)
    wsel = (eye_r[:, :, None] * w_all[None, None, :]).reshape(r, lanes)
    b_tiled = jnp.tile(b_all, (r,)).reshape(1, lanes)

    # Pad rows so rows is a multiple of 8 (clean sublane tiling, MXU-friendly
    # even for tiny inputs) and a multiple of r; padded rows are sliced away.
    rows = pl.cdiv(n, r)
    rows = max(8, ((rows + 7) // 8) * 8)
    n_pad = rows * r
    xf = x.reshape(-1).astype(jnp.float32)
    if n_pad > n:
        xf = jnp.pad(xf, (0, n_pad - n))
    xf = xf.reshape(rows, r)                       # contiguous, free reshape

    # Row tile: ~block_bytes of output per block, multiple of 8 rows.
    row_bytes = lanes * jnp.dtype(out_dtype).itemsize
    tm = max(8, (block_bytes // row_bytes) // 8 * 8)
    # v7x megacore: aim for ~4 grid steps on small/medium inputs so both
    # TensorCores get work (no effect once rows is large).
    if rows >= 32:
        tm = min(tm, ((pl.cdiv(rows, 4) + 7) // 8) * 8)
    if tm >= rows:
        tm = rows
    grid = (pl.cdiv(rows, tm),)

    # Explicit VMEM budget: double-buffered output + lane-padded x tile + params.
    x_tile_lanes = max(r, 128)                     # (tm, r) pads to 128 lanes
    vmem_needed = (2 * tm * lanes * jnp.dtype(out_dtype).itemsize
                   + 4 * (2 * tm * x_tile_lanes
                          + 2 * max(r, 8) * lanes + 2 * 8 * lanes))
    vmem_limit = int(min(64 * 1024 * 1024,
                         max(32 * 1024 * 1024, vmem_needed * 5 // 4)))

    cost = pl.CostEstimate(
        flops=2 * n * out_dim,
        transcendentals=n * max(out_dim - 1, 0),
        bytes_accessed=4 * n + n_pad * lanes // r * jnp.dtype(out_dtype).itemsize
        + 4 * (wsel.size + b_tiled.size))

    out = pl.pallas_call(
        functools.partial(_t2v_kernel, out_dim=out_dim,
                          lane_group=lane_group, use_mxu=(r > 1)),
        out_shape=jax.ShapeDtypeStruct((rows, lanes), out_dtype),
        grid_spec=pltpu.PrefetchScalarGridSpec(
            num_scalar_prefetch=0,
            grid=grid,
            in_specs=[
                pl.BlockSpec((tm, r), lambda i: (i, 0)),
                pl.BlockSpec((r, lanes), lambda i: (0, 0)),
                pl.BlockSpec((1, lanes), lambda i: (0, 0)),
            ],
            out_specs=pl.BlockSpec((tm, lanes), lambda i: (i, 0)),
        ),
        compiler_params=pltpu.CompilerParams(
            dimension_semantics=("parallel",),
            vmem_limit_bytes=vmem_limit),
        cost_estimate=cost,
    )(xf, wsel, b_tiled)

    # (rows, lanes) -> (n_pad, group) -> drop row/feature padding -> (B, L, out_dim)
    out2d = out.reshape(rows * r, lane_group)
    if feat_pad:
        out2d = out2d[:, :out_dim]
    if n_pad > n:
        out2d = out2d[:n]
    return out2d.reshape(B, L, out_dim)


def _reference(x, w, b, w0, b0):
    xs = x.astype(jnp.float32) / 47.0
    v1 = jnp.sin(xs[..., None] * w.reshape(1, 1, -1) + b.reshape(1, 1, -1))
    v2 = xs[..., None] * w0.reshape(()) + b0.reshape(())
    return jnp.concatenate([v1, v2], axis=-1)


if __name__ == "__main__":
    key = jax.random.PRNGKey(0)
    k1, k2, k3, k4, k5 = jax.random.split(key, 5)

    B, L, out_dim = 2, 16, 32

    # Parameters with the same shapes as SineActivation(1, out_dim).
    w0 = jax.random.normal(k1, (1, 1, 1), jnp.float32)
    b0 = jax.random.normal(k2, (1, 1, 1), jnp.float32)
    w = jax.random.normal(k3, (1, 1, out_dim - 1), jnp.float32)
    b = jax.random.normal(k4, (1, out_dim - 1, 1), jnp.float32)

    # Input: integer-like timestamps (forward casts .float() and divides by 47).
    x = jax.random.randint(k5, (B, L), 0, 48).astype(jnp.float32)

    out = jax.block_until_ready(origin_time2vec(x, w, b, w0, b0))
    ref = _reference(x, w, b, w0, b0)
    assert out.shape == (B, L, out_dim), out.shape
    assert jnp.allclose(out, ref, atol=1e-5, rtol=1e-5), float(
        jnp.max(jnp.abs(out - ref)))

    # Second check: row padding, multiple grid steps, partial final block.
    x2 = jax.random.randint(jax.random.PRNGKey(1), (2, 500), 0, 48)
    x2 = x2.astype(jnp.float32)
    out2 = jax.block_until_ready(
        origin_time2vec(x2, w, b, w0, b0, block_bytes=16 * 1024))
    ref2 = _reference(x2, w, b, w0, b0)
    assert out2.shape == (2, 500, out_dim), out2.shape
    assert jnp.allclose(out2, ref2, atol=1e-5, rtol=1e-5), float(
        jnp.max(jnp.abs(out2 - ref2)))

    print("KERNEL_OK")
</pallas_src>

<mosaic_0001>
module attributes {stable_mosaic.version = 11 : i64} {
  func.func @_t2v_kernel(%arg0: i32, %arg1: memref<8x16xf32, #tpu.memory_space<vmem>>, %arg2: memref<16x512xf32, #tpu.memory_space<vmem>>, %arg3: memref<1x512xf32, #tpu.memory_space<vmem>>, %arg4: memref<8x512xf32, #tpu.memory_space<vmem>>) attributes {dimension_semantics = [#tpu.dimension_semantics<parallel>], iteration_bounds = array<i64: 1>, scalar_prefetch = 0 : i64, scratch_operands = 0 : i64, tpu.core_type = #tpu.core_type<tc>, window_params = [{transform_indices = @transform_0, window_bounds = array<i64: 8, 16>}, {pipeline_mode = #tpu.pipeline_mode<synchronous>, transform_indices = @transform_1, window_bounds = array<i64: 16, 512>}, {pipeline_mode = #tpu.pipeline_mode<synchronous>, transform_indices = @transform_2, window_bounds = array<i64: 1, 512>}, {transform_indices = @transform_3, window_bounds = array<i64: 8, 512>}]} {
    %c0 = arith.constant 0 : index
    %c0_0 = arith.constant 0 : index
    %0 = vector.load %arg1[%c0, %c0_0] : memref<8x16xf32, #tpu.memory_space<vmem>>, vector<8x16xf32>
    %cst = arith.constant 4.700000e+01 : f32
    %1 = vector.broadcast %cst : f32 to vector<8x16xf32>
    %2 = arith.divf %0, %1 : vector<8x16xf32>
    %c0_1 = arith.constant 0 : index
    %c0_2 = arith.constant 0 : index
    %3 = vector.load %arg2[%c0_1, %c0_2] : memref<16x512xf32, #tpu.memory_space<vmem>>, vector<16x512xf32>
    %cst_3 = arith.constant dense<0.000000e+00> : vector<8x512xf32>
    %4 = tpu.matmul %2, %3, %cst_3 {dimension_numbers = #tpu.dot_dimension_numbers<[1], [0], [0], [1], [0, 0, 1, 1], [], []>, precision = #tpu.contract_precision<fp32>} : vector<8x16xf32>, vector<16x512xf32>, vector<8x512xf32> -> vector<8x512xf32>
    %c0_4 = arith.constant 0 : index
    %c0_5 = arith.constant 0 : index
    %5 = vector.load %arg3[%c0_4, %c0_5] : memref<1x512xf32, #tpu.memory_space<vmem>>, vector<1x512xf32>
    %6 = vector.broadcast %5 : vector<1x512xf32> to vector<8x512xf32>
    %7 = arith.addf %4, %6 : vector<8x512xf32>
    %8 = tpu.iota {dimensions = array<i32: 1>} : vector<1x512xi32>
    %c32_i32 = arith.constant 32 : i32
    %c0_i32 = arith.constant 0 : i32
    %9 = arith.cmpi eq, %c32_i32, %c0_i32 : i32
    %c1_i32 = arith.constant 1 : i32
    %10 = arith.select %9, %c1_i32, %c32_i32 : i32
    %11 = vector.broadcast %10 : i32 to vector<1x512xi32>
    %12 = arith.remsi %8, %11 : vector<1x512xi32>
    %c0_i32_6 = arith.constant 0 : i32
    %13 = vector.broadcast %c0_i32_6 : i32 to vector<1x512xi32>
    %14 = arith.cmpi ne, %12, %13 : vector<1x512xi32>
    %c0_i32_7 = arith.constant 0 : i32
    %15 = vector.broadcast %c0_i32_7 : i32 to vector<1x512xi32>
    %16 = arith.cmpi slt, %12, %15 : vector<1x512xi32>
    %c0_i32_8 = arith.constant 0 : i32
    %17 = arith.cmpi slt, %10, %c0_i32_8 : i32
    %18 = vector.broadcast %17 : i1 to vector<1x512xi1>
    %19 = vector.broadcast %18 : vector<1x512xi1> to vector<1x512xi1>
    %20 = arith.xori %16, %19 : vector<1x512xi1>
    %21 = arith.andi %20, %14 : vector<1x512xi1>
    %22 = vector.broadcast %10 : i32 to vector<1x512xi32>
    %23 = arith.addi %12, %22 : vector<1x512xi32>
    %24 = arith.select %21, %23, %12 : vector<1x512xi1>, vector<1x512xi32>
    %c31_i32 = arith.constant 31 : i32
    %25 = vector.broadcast %c31_i32 : i32 to vector<1x512xi32>
    %26 = arith.cmpi eq, %24, %25 : vector<1x512xi32>
    %27 = math.sin %7 : vector<8x512xf32>
    %28 = vector.shape_cast %26 : vector<1x512xi1> to vector<1x512xi1>
    %29 = vector.broadcast %28 : vector<1x512xi1> to vector<8x512xi1>
    %30 = arith.select %29, %7, %27 : vector<8x512xi1>, vector<8x512xf32>
    %c0_9 = arith.constant 0 : index
    %c0_10 = arith.constant 0 : index
    %31 = vector.load %arg4[%c0_9, %c0_10] : memref<8x512xf32, #tpu.memory_space<vmem>>, vector<8x512xf32>
    tpu.vector_store %arg4[%c0_9, %c0_10], %30 {strides = array<i32>} : memref<8x512xf32, #tpu.memory_space<vmem>>, vector<8x512xf32>,
    return
  }
  func.func @transform_0(%arg0: i32) -> (i32, i32) {
    %c0_i32 = arith.constant 0 : i32
    %c0_i32_0 = arith.constant 0 : i32
    return %arg0, %c0_i32 : i32, i32
  }
  func.func @transform_1(%arg0: i32) -> (i32, i32) {
    %c0_i32 = arith.constant 0 : i32
    %c0_i32_0 = arith.constant 0 : i32
    %c0_i32_1 = arith.constant 0 : i32
    return %c0_i32, %c0_i32_0 : i32, i32
  }
  func.func @transform_2(%arg0: i32) -> (i32, i32) {
    %c0_i32 = arith.constant 0 : i32
    %c0_i32_0 = arith.constant 0 : i32
    %c0_i32_1 = arith.constant 0 : i32
    return %c0_i32, %c0_i32_0 : i32, i32
  }
  func.func @transform_3(%arg0: i32) -> (i32, i32) {
    %c0_i32 = arith.constant 0 : i32
    %c0_i32_0 = arith.constant 0 : i32
    return %arg0, %c0_i32 : i32, i32
  }
}

</mosaic_0001>

<bundles_post_ra>
// kernel: tpu_custom_call.1
= control target key start
LH: loop header
LB: loop body
LE: loop exit
PB: predicated region body
PF: predicated region fallthrough
CT: control target
= control target key end

     0   :  { %8 = vsyncpa [#allocation3], 0  ;;  %s2260_s0 = inlined_call_operand.hbm [shape: f32[8,16], index: 0, kind: input, shape index: {}]   ;;  %s2261_s1 = inlined_call_operand.hbm [shape: f32[16,512], index: 1, kind: input, shape index: {}]   ;;  %s2262_s2 = inlined_call_operand.vmem [shape: f32[1,512], index: 2, kind: input, shape index: {}]   ;;  %s2263_s3 = inlined_call_operand.hbm [shape: f32[8,512], index: 3, kind: output, shape index: {}]  }
   0x1   :  { %9 = vsyncpa [#allocation6], 0 }
   0x2   :  { %10 = vsyncpa [#allocation4], 0  ;;  %s1769_s12 = smov [#allocation2]   ;;  %s1770_s14 = smov [#allocation5]  }
   0x3   :  { %s17_s13 = sshll.u32 %s1769_s12, 4  ;;  %s26_s15 = sshll.u32 %s1770_s14, 4  ;;  %s18_s13 = int_to_ptr.vmem [resolvable:$true] %s17_s13  ;;  %s1801_s15 = int_to_ptr.vmem [resolvable:$true] %s26_s15 }
   0x4   :  { %s1697_s18 = scalar_lea.hbm %s2260_s0, 128 }
   0x5   :  { %p1698_p0 = scmp.ne.s32.totalorder %s2260_s0, %s1697_s18  ;;  %p1701_p1 = scmp.lt.u32.totalorder %s1697_s18, %s2260_s0 }
   0x7   :  { %p1703_p2 = pnand %p1701_p1, %p1698_p0 }
   0x9   :  { %1706 = shalt.err (!%p1703_p2)
}
   0xa   :  { %s1707_s23 = scalar_lea.vmem %s18_s13, 128  ;;  %p1712_p4 = scmp.lt.s32.totalorder %s18_s13, %s18_s13 }
   0xb   :  { %p1708_p3 = scmp.ne.s32.totalorder %s18_s13, %s1707_s23  ;;  %p1713_p5 = scmp.lt.s32.totalorder %s1707_s23, %s1707_s23 }
   0xd   :  { %p1714_p6 = por %p1713_p5, %p1712_p4 }
   0xf   :  { %p1715_p7 = pnand %p1714_p6, %p1708_p3 }
  0x11   :  { %1718 = shalt.err (!%p1715_p7)
}
  0x12   :  { %20 = dma.hbm_to_vmem [thread:$0]  %s2260_s0, 128, %s18_s13, [#allocation3]  }
  0x13   :  { %s1719_s28 = scalar_lea.hbm %s2261_s1, 1024 }
  0x14   :  { %p1720_p8 = scmp.ne.s32.totalorder %s2261_s1, %s1719_s28  ;;  %p1723_p9 = scmp.lt.u32.totalorder %s1719_s28, %s2261_s1 }
  0x16   :  { %p1725_p10 = pnand %p1723_p9, %p1720_p8 }
  0x18   :  { %1728 = shalt.err (!%p1725_p10)
}
  0x19   :  { %s1729_s6 = scalar_lea.vmem %s1801_s15, 1024  ;;  %p1734_p12 = scmp.lt.s32.totalorder %s1801_s15, %s1801_s15 }
  0x1a   :  { %p1730_p11 = scmp.ne.s32.totalorder %s1801_s15, %s1729_s6  ;;  %p1735_p13 = scmp.lt.s32.totalorder %s1729_s6, %s1729_s6 }
  0x1c   :  { %p1736_p0 = por %p1735_p13, %p1734_p12 }
  0x1e   :  { %p1737_p1 = pnand %p1736_p0, %p1730_p11 }
  0x20   :  { %1740 = shalt.err (!%p1737_p1)
}
  0x21   :  { %s1771_s0 = smov 512   ;;  %s1772_s7 = smov 32  }
  0x22   :  { %32 = dma.hbm_to_vmem [thread:$0]  %s2261_s1, 1024, %s1801_s15, [#allocation6], %s1771_s0, %s1771_s0, %s1772_s7  }
  0x23   :  { %1763 = dma.done.wait [#allocation3], 128  }
  0x24   :  { %1764 = vsyncadd [#allocation3], 4294967168 }
  0x25   :  { %1765 = dma.done.wait [#allocation6], 1024  }
  0x26   :  { %1766 = vsyncadd [#allocation6], 4294966272  ;;  %v1773_v0 = vmov 0.0   ;;  %v45_v1 = vld [vmem:[#allocation5 + $0x8] sm:$0xff]  ;;  %v47_v3 = vld [vmem:[#allocation5 + $0x18] sm:$0xff]  ;;  %vm74_vm0 = vcmask 130048  }
  0x27   :  { %146 = vmatprep.mubr.f32.mxu0 %v1773_v0  ;;  %637 = vmatprep.mubr.f32.mxu1 %v1773_v0  ;;  %v49_v2 = vld [vmem:[#allocation5 + $0x28] sm:$0xff]  ;;  %v78_v4 = vand.u32 4294901760, %v45_v1  ;;  %v51_v6 = vld [vmem:[#allocation5 + $0x38] sm:$0xff]  ;;  %v569_v7 = vand.u32 4294901760, %v47_v3  ;;  %v44_v8 = vld [vmem:[#allocation5] sm:$0xff] }
  0x28   :  { %v82_v5 = vand.u32 4294901760, %v49_v2  ;;  %v48_v9 = vld [vmem:[#allocation5 + $0x20] sm:$0xff]  ;;  %v573_v10 = vand.u32 4294901760, %v51_v6  ;;  %v80_v11 = vand.u32 4294901760, %v44_v8  ;;  %v46_v13 = vld [vmem:[#allocation5 + $0x10] sm:$0xff]  ;;  %v41_v19 = vld [vmem:[#allocation2] sm:$0xff] }
  0x29   :  { %v84_v12 = vand.u32 4294901760, %v48_v9  ;;  %v50_v14 = vld [vmem:[#allocation5 + $0x30] sm:$0xff]  ;;  %v1836_v16 = vsub.f32 %v45_v1, %v78_v4  ;;  %v1840_v18 = vsub.f32 %v47_v3, %v569_v7  ;;  %v571_v25 = vand.u32 4294901760, %v46_v13 }
  0x2a   :  { %v1834_v15 = vpack.c.bf16 %v82_v5, %v78_v4  ;;  %v1838_v17 = vsub.f32 %v49_v2, %v82_v5  ;;  %v1842_v20 = vpack.c.bf16 %v573_v10, %v569_v7  ;;  %v1844_v21 = vsub.f32 %v51_v6, %v573_v10 }
  0x2b   :  { %v1846_v22 = vpack.c.bf16 %v84_v12, %v80_v11  ;;  %v1848_v23 = vsub.f32 %v44_v8, %v80_v11  ;;  %v1851_v24 = vsub.f32 %v48_v9, %v84_v12  ;;  %v575_v26 = vand.u32 4294901760, %v50_v14 }
  0x2c   :  { %1582 = vmatprep.subr.bf16.mxu0 %v1834_v15  ;;  %v160_v27 = vand.u32 4294901760, %v1836_v16  ;;  %1606 = vmatprep.subr.bf16.mxu1 %v1842_v20  ;;  %v172_v28 = vand.u32 4294901760, %v1838_v17  ;;  %v651_v29 = vand.u32 4294901760, %v1840_v18  ;;  %v663_v30 = vand.u32 4294901760, %v1844_v21 }
  0x2d   :  { %1584 = vmatpush1.bf16.msra.mxu0 %v1846_v22  ;;  %v43_v31 = vmul.f32 0.021276595, %v41_v19  ;;  %v1859_v32 = vpack.c.bf16 %v575_v26, %v571_v25  ;;  %v1861_v33 = vsub.f32 %v46_v13, %v571_v25  ;;  %v1863_v34 = vsub.f32 %v50_v14, %v575_v26  ;;  %v52_v14 = vld [vmem:[%s2262_s2] sm:$0xf]  ;;  %s1780_s2 = smov [#allocation7]  }
  0x2e   :  { %v161_v35 = vsub.f32 %v1836_v16, %v160_v27  ;;  %v173_v36 = vsub.f32 %v1838_v17, %v172_v28  ;;  %v652_v37 = vsub.f32 %v1840_v18, %v651_v29  ;;  %v664_v38 = vsub.f32 %v1844_v21, %v663_v30  ;;  %s1555_s11 = sshll.u32 %s1780_s2, 4  ;;  %s1556_s11 = int_to_ptr.vmem [resolvable:$true] %s1555_s11 }
  0x2f   :  { %v76_v39 = vsel %vm74_vm0, %v43_v31, 0  ;;  %1608 = vmatpush1.bf16.msra.mxu1 %v1859_v32  ;;  %v166_v42 = vand.u32 4294901760, %v1848_v23  ;;  %v178_v43 = vand.u32 4294901760, %v1851_v24  ;;  %v657_v47 = vand.u32 4294901760, %v1861_v33  ;;  %s1741_s12 = scalar_lea.vmem %s1556_s11, 512  ;;  %p1746_p3 = scmp.lt.s32.totalorder %s1556_s11, %s1556_s11 }
  0x30   :  { %v162_v40 = vand.u32 4294901760, %v161_v35  ;;  %v1873_v41 = vand.u32 4294901760, %v76_v39  ;;  %v174_v44 = vand.u32 4294901760, %v173_v36  ;;  %v653_v45 = vand.u32 4294901760, %v652_v37  ;;  %p1742_p2 = scmp.ne.s32.totalorder %s1556_s11, %s1741_s12  ;;  %p1747_p4 = scmp.lt.s32.totalorder %s1741_s12, %s1741_s12 }
  0x31   :  { %v665_v46 = vand.u32 4294901760, %v664_v38  ;;  %v167_v49 = vsub.f32 %v1848_v23, %v166_v42  ;;  %v179_v50 = vsub.f32 %v1851_v24, %v178_v43  ;;  %v669_v51 = vand.u32 4294901760, %v1863_v34 }
  0x32   :  { %v148_v48 = vsub.f32 %v76_v39, %v1873_v41  ;;  %v1585_v52 = vpack.c.bf16 %v174_v44, %v162_v40  ;;  %v658_v54 = vsub.f32 %v1861_v33, %v657_v47  ;;  %v1589_v2 = vpack.c.bf16 %v1838_v17, %v1836_v16  ;;  %p1748_p5 = por %p1747_p4, %p1746_p3 }
  0x33   :  { %v1609_v53 = vpack.c.bf16 %v665_v46, %v653_v45  ;;  %v168_v56 = vand.u32 4294901760, %v167_v49  ;;  %v180_v57 = vand.u32 4294901760, %v179_v50  ;;  %v670_v58 = vsub.f32 %v1863_v34, %v669_v51 }
  0x34   :  { %v149_v55 = vand.u32 4294901760, %v148_v48  ;;  %1586 = vmatprep.subr.bf16.mxu0 %v1585_v52  ;;  %v659_v59 = vand.u32 4294901760, %v658_v54  ;;  %v1613_v3 = vpack.c.bf16 %v1844_v21, %v1840_v18  ;;  %v1591_v4 = vpack.c.bf16 %v1851_v24, %v1848_v23  ;;  %p1749_p6 = pnand %p1748_p5, %p1742_p2 }
  0x35   :  { %1610 = vmatprep.subr.bf16.mxu1 %v1609_v53  ;;  %v671_v61 = vand.u32 4294901760, %v670_v58  ;;  %v1587_v62 = vpack.c.bf16 %v180_v57, %v168_v56  ;;  %v1615_v5 = vpack.c.bf16 %v1863_v34, %v1861_v33  ;;  %v1597_v6 = vpack.c.bf16 %v172_v28, %v160_v27 }
  0x36   :  { %v150_v60 = vsub.f32 %v148_v48, %v149_v55  ;;  %v1621_v7 = vpack.c.bf16 %v663_v30, %v651_v29  ;;  %v1599_v8 = vpack.c.bf16 %v178_v43, %v166_v42  ;;  %v1623_v9 = vpack.c.bf16 %v669_v51, %v657_v47 }
  0x37   :  { %v1611_v1 = vpack.c.bf16 %v671_v61, %v659_v59  ;;  %v54_v10 = vlaneseq  ;;  %v1774_v61 = vmov 683565275  }
  0x38   :  { %v151_v63 = vand.u32 4294901760, %v150_v60 }
  0x39   :  { %v55_v11 = vshrl.u32 %v54_v10, 7  ;;  %v1939_v38 = vand.u32 127, %v54_v10 }
  0x3a   :  { %152 = vmatmul.mubr.f32.vlgmr.msra.gmra.mrb[0].mxu0 %v151_v63  ;;  %643 = vmatmul.mubr.f32.vlgmr.msra.gmra.mrb[0].mxu1 %v151_v63  ;;  %v1775_v63 = vmov 2475754826  }
  0x3b   :  { %1588 = vmatpush1.bf16.msra.mxu0 %v1587_v62  ;;  %1612 = vmatpush1.bf16.msra.mxu1 %v1611_v1  ;;  %v56_v12 = vsub.s32 0, %v55_v11  ;;  %v64_v13 = vsub.s32 2, %v55_v11  ;;  %v68_v19 = vsub.s32 3, %v55_v11 }
  0x3c   :  { %242 = vmatprep.mubr.f32.mxu0 %v1773_v0  ;;  %1590 = vmatprep.subr.bf16.mxu0 %v1589_v2 }
  0x3d   :  { %733 = vmatprep.mubr.f32.mxu1 %v1773_v0  ;;  %1614 = vmatprep.subr.bf16.mxu1 %v1613_v3  ;;  %v57_v16 = vrot.slane %v52_v14, %v56_v12  ;;  %v65_v17 = vrot.slane %v52_v14, %v64_v13  ;;  %v69_v26 = vrot.slane %v52_v14, %v68_v19  ;;  %v1776_v3 = vmov 2131351028  }
  0x42   :  { %244 = vmatmul.mubr.f32.vlgmr.msra.gmra.mrb[0].mxu0 %v1873_v41  ;;  %735 = vmatmul.mubr.f32.vlgmr.msra.gmra.mrb[0].mxu1 %v1873_v41 }
  0x43   :  { %1592 = vmatpush1.bf16.msra.mxu0 %v1591_v4  ;;  %1616 = vmatpush1.bf16.msra.mxu1 %v1615_v5  ;;  %v1777_v5 = vmov 2102212464  }
  0x44   :  { %322 = vmatprep.mubr.f32.mxu0 %v1773_v0  ;;  %1594 = vmatprep.subr.bf16.mxu0 %v1834_v15 }
  0x45   :  { %813 = vmatprep.mubr.f32.mxu1 %v1773_v0  ;;  %1618 = vmatprep.subr.bf16.mxu1 %v1842_v20 }
  0x4a   :  { %325 = vmatmul.mubr.f32.vlgmr.msra.gmra.mrb[0].mxu0 %v148_v48  ;;  %816 = vmatmul.mubr.f32.vlgmr.msra.gmra.mrb[0].mxu1 %v148_v48 }
  0x4b   :  { %1596 = vmatpush1.bf16.msra.mxu0 %v1846_v22  ;;  %1620 = vmatpush1.bf16.msra.mxu1 %v1859_v32 }
  0x4c   :  { %399 = vmatprep.mubr.f32.mxu0 %v1773_v0  ;;  %1598 = vmatprep.subr.bf16.mxu0 %v1597_v6 }
  0x4d   :  { %890 = vmatprep.mubr.f32.mxu1 %v1773_v0  ;;  %1622 = vmatprep.subr.bf16.mxu1 %v1621_v7  ;;  %v1778_v7 = vmov 920167782  }
  0x52   :  { %403 = vmatmul.mubr.f32.vlgmr.msra.gmra.mrb[0].mxu0 %v149_v55  ;;  %894 = vmatmul.mubr.f32.vlgmr.msra.gmra.mrb[0].mxu1 %v149_v55 }
  0x53   :  { %1600 = vmatpush1.bf16.msra.mxu0 %v1599_v8  ;;  %1624 = vmatpush1.bf16.msra.mxu1 %v1623_v9 }
  0x54   :  { %485 = vmatprep.mubr.f32.mxu0 %v1773_v0  ;;  %1602 = vmatprep.subr.bf16.mxu0 %v1834_v15  ;;  %v60_v15 = vsub.s32 1, %v55_v11 }
  0x55   :  { %976 = vmatprep.mubr.f32.mxu1 %v1773_v0  ;;  %1626 = vmatprep.subr.bf16.mxu1 %v1842_v20 }
  0x56   :  { %v61_v18 = vrot.slane %v52_v14, %v60_v15  ;;  %v1779_v14 = vmov 1326507024  }
  0x5a   :  { %487 = vmatmul.mubr.f32.vlgmr.msra.gmra.mrb[0].mxu0 %v1873_v41  ;;  %978 = vmatmul.mubr.f32.vlgmr.msra.gmra.mrb[0].mxu1 %v1873_v41 }
  0x5b   :  { %1604 = vmatpush1.bf16.msra.mxu0 %v1846_v22  ;;  %1628 = vmatpush1.bf16.msra.mxu1 %v1859_v32 }
  0x5c   :  { %561 = vmatprep.mubr.f32.mxu0 %v1773_v0  ;;  %1052 = vmatprep.mubr.f32.mxu1 %v1773_v0 }
  0x62   :  { %563 = vmatmul.mubr.f32.vlgmr.msra.gmra.mrb[0].mxu0 %v1873_v41  ;;  %1054 = vmatmul.mubr.f32.vlgmr.msra.gmra.mrb[0].mxu1 %v1873_v41 }
 0x135   :  { %v564_v20 = vpop.f32.mrb[0].mxu0  ;;  %v1055_v21 = vpop.f32.mrb[0].mxu1 }
 0x136   :  { %v1921_v0 = vadd.f32 %v564_v20, %v57_v16  ;;  %v1923_v22 = vadd.f32 %v1055_v21, %v65_v17  ;;  %v566_v23 = vpop.f32.mrb[1].mxu0  ;;  %v1057_v24 = vpop.f32.mrb[1].mxu1 }
 0x137   :  { %v1925_v25 = vadd.f32 %v566_v23, %v61_v18  ;;  %v1937_v37 = vadd.f32 %v1057_v24, %v69_v26 }
 0x138   :  { %v1117_v27 = vand.u32 2147483647, %v1921_v0  ;;  %v1120_v28 = vand.u32 2139095040, %v1921_v0  ;;  %v1325_v29 = vand.u32 2147483647, %v1923_v22  ;;  %v1328_v30 = vand.u32 2139095040, %v1923_v22 }
 0x139   :  { %v1224_v33 = vand.u32 2139095040, %v1925_v25  ;;  %v1221_v36 = vand.u32 2147483647, %v1925_v25  ;;  %v1432_v48 = vand.u32 2139095040, %v1937_v37 }
 0x13a   :  { %v1121_v31 = vshrl.u32 %v1120_v28, 23  ;;  %v1124_v32 = vand.u32 8388607, %v1117_v27  ;;  %v1329_v34 = vshrl.u32 %v1328_v30, 23  ;;  %v1332_v35 = vand.u32 8388607, %v1325_v29 }
 0x13b   :  { %v1225_v40 = vshrl.u32 %v1224_v33, 23  ;;  %v1943_v47 = vand.u32 8388607, %v1221_v36  ;;  %v1953_v59 = vshrl.u32 %v1432_v48, 23 }
 0x13c   :  { %v1565_v39 = vadd.s32 4294967169, %v1121_v31  ;;  %v1125_v41 = vor.u32 8388608, %v1124_v32  ;;  %v1573_v42 = vadd.s32 4294967169, %v1329_v34  ;;  %v1333_v43 = vor.u32 8388608, %v1332_v35 }
 0x13d   :  { %v1569_v45 = vadd.s32 4294967169, %v1225_v40  ;;  %v1229_v58 = vor.u32 8388608, %v1943_v47 }
 0x13e   :  { %v1127_v44 = vadd.s32 1, %v1565_v39  ;;  %v1335_v46 = vadd.s32 1, %v1573_v42  ;;  %v1946_v51 = vshll.u32 %v1125_v41, 8  ;;  %v1948_v52 = vshll.u32 %v1333_v43, 8 }
 0x13f   :  { %v1231_v49 = vadd.s32 1, %v1569_v45 }
 0x140   :  { %vm1128_vm1 = vcmp.gt.s32.totalorder %v1127_v44, 0  ;;  %vm1336_vm2 = vcmp.gt.s32.totalorder %v1335_v46, 0 }
 0x141   :  { %v1129_v50 = vsel %vm1128_vm1, %v1127_v44, 0  ;;  %v1337_v55 = vsel %vm1336_vm2, %v1335_v46, 0  ;;  %vm1232_vm3 = vcmp.gt.s32.totalorder %v1231_v49, 0  ;;  %vm1119_vm1 = vcmp.lt.s32.totalorder %v1921_v0, 0 }
 0x142   :  { %v1130_v53 = vshrl.u32 %v1129_v50, 5  ;;  %v1131_v54 = vand.u32 31, %v1129_v50  ;;  %v1950_v56 = vshrl.u32 %v1337_v55, 5  ;;  %v1339_v57 = vand.u32 31, %v1337_v55 }
 0x143   :  { %v1957_v2 = vsel %vm1232_vm3, %v1231_v49, 0  ;;  %vm1327_vm3 = vcmp.lt.s32.totalorder %v1923_v22, 0 }
 0x144   :  { %v1132_v60 = vsub.s32 32, %v1131_v54  ;;  %v1134_v62 = vshll.u32 %v1774_v61, %v1131_v54  ;;  %v1137_v1 = vshll.u32 %v1775_v63, %v1131_v54  ;;  %v1140_v4 = vshll.u32 %v1776_v3, %v1131_v54 }
 0x145   :  { %v1143_v6 = vshll.u32 %v1777_v5, %v1131_v54  ;;  %v1146_v8 = vshll.u32 %v1778_v7, %v1131_v54  ;;  %vm1149_vm4 = vcmp.lt.s32.totalorder %v1130_v53, 1  ;;  %vm1150_vm5 = vcmp.lt.s32.totalorder %v1130_v53, 2 }
 0x146   :  { %v1135_v9 = vshrl.u32 %v1775_v63, %v1132_v60  ;;  %v1138_v10 = vshrl.u32 %v1776_v3, %v1132_v60  ;;  %v1141_v11 = vshrl.u32 %v1777_v5, %v1132_v60  ;;  %v1133_v12 = vshrl.u32 %v1774_v61, %v1132_v60 }
 0x147   :  { %v1144_v13 = vshrl.u32 %v1778_v7, %v1132_v60  ;;  %v1147_v15 = vshrl.u32 %v1779_v14, %v1132_v60  ;;  %vm1151_vm6 = vcmp.lt.s32.totalorder %v1130_v53, 3  ;;  %v1340_v19 = vsub.s32 32, %v1339_v57 }
 0x148   :  { %v1136_v16 = vor.u32 %v1135_v9, %v1134_v62  ;;  %v1139_v17 = vor.u32 %v1138_v10, %v1137_v1  ;;  %v1142_v18 = vor.u32 %v1141_v11, %v1140_v4  ;;  %vm1152_vm7 = vcmp.lt.s32.totalorder %v1130_v53, 4 }
 0x149   :  { %v1145_v20 = vor.u32 %v1144_v13, %v1143_v6  ;;  %v1148_v21 = vor.u32 %v1147_v15, %v1146_v8  ;;  %v1342_v23 = vshll.u32 %v1774_v61, %v1339_v57  ;;  %v1345_v34 = vshll.u32 %v1775_v63, %v1339_v57 }
 0x14a   :  { %v1153_v24 = vsel %vm1149_vm4, %v1133_v12, %v1136_v16  ;;  %v1154_v26 = vsel %vm1152_vm7, %v1142_v18, 2102212464  ;;  %v1157_v28 = vsel %vm1149_vm4, %v1136_v16, %v1139_v17  ;;  %v1161_v30 = vsel %vm1149_vm4, %v1139_v17, %v1142_v18 }
 0x14b   :  { %v1155_v31 = vsel %vm1151_vm6, %v1139_v17, %v1154_v26  ;;  %v1158_v32 = vsel %vm1152_vm7, %v1145_v20, 920167782  ;;  %v1162_v33 = vsel %vm1152_vm7, %v1148_v21, 1326507024  ;;  %v1341_v40 = vshrl.u32 %v1774_v61, %v1340_v19 }
 0x14c   :  { %v1159_v35 = vsel %vm1151_vm6, %v1142_v18, %v1158_v32  ;;  %v1163_v39 = vsel %vm1151_vm6, %v1145_v20, %v1162_v33  ;;  %v1343_v41 = vshrl.u32 %v1775_v63, %v1340_v19  ;;  %v1156_v42 = vsel %vm1150_vm5, %v1153_v24, %v1155_v31 }
 0x14d   :  { %v1160_v43 = vsel %vm1150_vm5, %v1157_v28, %v1159_v35  ;;  %v1164_v44 = vsel %vm1150_vm5, %v1161_v30, %v1163_v39  ;;  %v1346_v45 = vshrl.u32 %v1776_v3, %v1340_v19  ;;  %v1348_v60 = vshll.u32 %v1776_v3, %v1339_v57 }
 0x14e   :  { %v1983_v46 = vmul.u32.u64.low %v1946_v51, %v1164_v44  ;;  %v1984_v48 = vmul.u32.u64.high %v1946_v51, %v1164_v44, %v1983_v46  ;;  %v1987_v49 = vmul.u32.u64.low %v1946_v51, %v1160_v43  ;;  %v1988_v50 = vmul.u32.u64.high %v1946_v51, %v1160_v43, %v1987_v49 }
 0x14f   :  { %v1344_v54 = vor.u32 %v1343_v41, %v1342_v23  ;;  %v1347_v55 = vor.u32 %v1346_v45, %v1345_v34  ;;  %v1349_v62 = vshrl.u32 %v1777_v5, %v1340_v19  ;;  %v1172_v53 = vmul.u32 %v1946_v51, %v1156_v42 }
 0x150   :  { %v1351_v1 = vshll.u32 %v1777_v5, %v1339_v57  ;;  %v1352_v4 = vshrl.u32 %v1778_v7, %v1340_v19  ;;  %v1355_v6 = vshrl.u32 %v1779_v14, %v1340_v19  ;;  %v1354_v9 = vshll.u32 %v1778_v7, %v1339_v57 }
 0x151   :  { %v1350_v8 = vor.u32 %v1349_v62, %v1348_v60  ;;  %vm1357_vm8 = vcmp.lt.s32.totalorder %v1950_v56, 1  ;;  %vm1358_vm9 = vcmp.lt.s32.totalorder %v1950_v56, 2  ;;  %vm1174_vm10 = vc.u32 %v1984_v48, %v1987_v49 }
 0x152   :  { %v1175_v10 = vadd.s32 1, %v1988_v50  ;;  %v1353_v11 = vor.u32 %v1352_v4, %v1351_v1  ;;  %vm1359_vm11 = vcmp.lt.s32.totalorder %v1950_v56, 3  ;;  %v1356_v51 = vor.u32 %v1355_v6, %v1354_v9 }
 0x153   :  { %vm1360_vm12 = vcmp.lt.s32.totalorder %v1950_v56, 4  ;;  %v1361_v12 = vsel %vm1357_vm8, %v1341_v40, %v1344_v54  ;;  %v1365_v13 = vsel %vm1357_vm8, %v1344_v54, %v1347_v55  ;;  %v1369_v17 = vsel %vm1357_vm8, %v1347_v55, %v1350_v8 }
 0x154   :  { %v1176_v15 = vsel %vm1174_vm10, %v1175_v10, %v1988_v50  ;;  %v1362_v57 = vsel %vm1360_vm12, %v1350_v8, 2102212464  ;;  %v1366_v16 = vsel %vm1360_vm12, %v1353_v11, 920167782  ;;  %v1370_v21 = vsel %vm1360_vm12, %v1356_v51, 1326507024 }
 0x155   :  { %v1177_v18 = vadd.s32 %v1176_v15, %v1172_v53  ;;  %v1363_v19 = vsel %vm1359_vm11, %v1347_v55, %v1362_v57  ;;  %v1367_v20 = vsel %vm1359_vm11, %v1350_v8, %v1366_v16  ;;  %v1371_v26 = vsel %vm1359_vm11, %v1353_v11, %v1370_v21 }
 0x156   :  { %v1364_v23 = vsel %vm1358_vm9, %v1361_v12, %v1363_v19  ;;  %v1368_v24 = vsel %vm1358_vm9, %v1365_v13, %v1367_v20  ;;  %v2011_v28 = vshrl.u32 %v1957_v2, 5  ;;  %v1372_v31 = vsel %vm1358_vm9, %v1369_v17, %v1371_v26 }
 0x157   :  { %v1178_v30 = vadd.s32 536870912, %v1177_v18  ;;  %v2016_v32 = vmul.u32.u64.low %v1948_v52, %v1368_v24  ;;  %v2017_v33 = vmul.u32.u64.high %v1948_v52, %v1368_v24, %v2016_v32  ;;  %v1235_v39 = vand.u32 31, %v1957_v2 }
 0x158   :  { %v2021_v34 = vmul.u32.u64.low %v1948_v52, %v1372_v31  ;;  %v2022_v35 = vmul.u32.u64.high %v1948_v52, %v1372_v31, %v2021_v34  ;;  %v2029_v41 = vshll.u32 %v1229_v58, 8  ;;  %v1429_v56 = vand.u32 2147483647, %v1937_v37 }
 0x159   :  { %v2025_v40 = vshrl.u32 %v1178_v30, 30  ;;  %v1069_v42 = vand.u32 31, %v1939_v38  ;;  %v1380_v43 = vmul.u32 %v1948_v52, %v1364_v23  ;;  %v1236_v44 = vsub.s32 32, %v1235_v39 }
 0x15a   :  { %vm1253_vm13 = vcmp.lt.s32.totalorder %v2011_v28, 1  ;;  %v1577_v45 = vadd.s32 4294967169, %v1953_v59  ;;  %v1383_v2 = vadd.s32 1, %v2017_v33  ;;  %v1238_v50 = vshll.u32 %v1774_v61, %v1235_v39 }
 0x15b   :  { %v1180_v46 = vshll.u32 %v2025_v40, 30  ;;  %vm1254_vm14 = vcmp.lt.s32.totalorder %v2011_v28, 2  ;;  %vm1255_vm15 = vcmp.lt.s32.totalorder %v2011_v28, 3  ;;  %vm1382_vm0 = vc.u32 %v2022_v35, %v2016_v32 }
 0x15c   :  { %v1239_v47 = vshrl.u32 %v1775_v63, %v1236_v44  ;;  %v1241_v52 = vshll.u32 %v1775_v63, %v1235_v39  ;;  %v1244_v58 = vshll.u32 %v1776_v3, %v1235_v39  ;;  %v1384_v54 = vsel %vm1382_vm0, %v1383_v2, %v2017_v33 }
 0x15d   :  { %v2046_v59 = vsub.s32 %v1177_v18, %v1180_v46  ;;  %v1242_v55 = vshrl.u32 %v1776_v3, %v1236_v44  ;;  %v1247_v60 = vshll.u32 %v1777_v5, %v1235_v39  ;;  %v1385_v62 = vadd.s32 %v1384_v54, %v1380_v43 }
 0x15e   :  { %v1240_v53 = vor.u32 %v1239_v47, %v1238_v50  ;;  %v1245_v1 = vshrl.u32 %v1777_v5, %v1236_v44  ;;  %v1248_v4 = vshrl.u32 %v1778_v7, %v1236_v44  ;;  %v1250_v9 = vshll.u32 %v1778_v7, %v1235_v39 }
 0x15f   :  { %v1183_v6 = vsub.s32 0, %v2046_v59  ;;  %v1243_v8 = vor.u32 %v1242_v55, %v1241_v52  ;;  %v1251_v10 = vshrl.u32 %v1779_v14, %v1236_v44  ;;  %v1203_v11 = vsub.s32 4, %v2025_v40 }
 0x160   :  { %v1386_v51 = vadd.s32 536870912, %v1385_v62  ;;  %v1246_v12 = vor.u32 %v1245_v1, %v1244_v58  ;;  %v1249_v13 = vor.u32 %v1248_v4, %v1247_v60  ;;  %vm1256_vm2 = vcmp.lt.s32.totalorder %v2011_v28, 4 }
 0x161   :  { %v1566_v15 = vmin.u32 %v1183_v6, %v2046_v59  ;;  %v1252_v57 = vor.u32 %v1251_v10, %v1250_v9  ;;  %v1261_v16 = vsel %vm1253_vm13, %v1240_v53, %v1243_v8  ;;  %v1237_v18 = vshrl.u32 %v1774_v61, %v1236_v44 }
 0x162   :  { %v1387_v17 = vshrl.u32 %v1386_v51, 30  ;;  %v1258_v19 = vsel %vm1256_vm2, %v1246_v12, 2102212464  ;;  %v1262_v20 = vsel %vm1256_vm2, %v1249_v13, 920167782  ;;  %v1265_v24 = vsel %vm1253_vm13, %v1243_v8, %v1246_v12 }
 0x163   :  { %v1185_v21 = vclz %v1566_v15  ;;  %v1263_v23 = vsel %vm1255_vm15, %v1246_v12, %v1262_v20  ;;  %v1266_v26 = vsel %vm1256_vm2, %v1252_v57, 1326507024  ;;  %v1257_v31 = vsel %vm1253_vm13, %v1237_v18, %v1240_v53 }
 0x164   :  { %v1388_v30 = vshll.u32 %v1387_v17, 30  ;;  %v1259_v33 = vsel %vm1255_vm15, %v1243_v8, %v1258_v19  ;;  %v1264_v34 = vsel %vm1254_vm14, %v1261_v16, %v1263_v23  ;;  %v1267_v43 = vsel %vm1255_vm15, %v1249_v13, %v1266_v26 }
 0x165   :  { %v1567_v39 = vadd.s32 4294967294, %v1185_v21  ;;  %v2077_v44 = vmul.u32.u64.low %v2029_v41, %v1264_v34  ;;  %v2078_v46 = vmul.u32.u64.high %v2029_v41, %v1264_v34, %v2077_v44  ;;  %v1173_v2 = vadd.s32 %v1987_v49, %v1984_v48 }
 0x166   :  { %v2082_v50 = vsub.s32 %v1385_v62, %v1388_v30  ;;  %v1268_v47 = vsel %vm1254_vm14, %v1265_v24, %v1267_v43  ;;  %v1436_v52 = vand.u32 8388607, %v1429_v56  ;;  %v1260_v58 = vsel %vm1254_vm14, %v1257_v31, %v1259_v33 }
 0x167   :  { %vm1568_vm4 = vcmp.lt.s32.totalorder %v1567_v39, 0  ;;  %v2091_v54 = vmul.u32.u64.low %v2029_v41, %v1268_v47  ;;  %v2092_v55 = vmul.u32.u64.high %v2029_v41, %v1268_v47, %v2091_v54  ;;  %v1204_v48 = vsel %vm1119_vm1, %v1203_v11, %v2025_v40 }
 0x168   :  { %v1188_v60 = vsel %vm1568_vm4, 0, %v1567_v39  ;;  %v1391_v49 = vsub.s32 0, %v2082_v50  ;;  %v1439_v62 = vadd.s32 1, %v1577_v45  ;;  %v1411_v4 = vsub.s32 4, %v1387_v17 }
 0x169   :  { %v1189_v53 = vsub.s32 32, %v1188_v60  ;;  %v1193_v1 = vsub.s32 4294967266, %v1188_v60  ;;  %v1279_v6 = vadd.s32 1, %v2078_v46  ;;  %v1276_v8 = vmul.u32 %v2029_v41, %v1260_v58 }
 0x16a   :  { %v1574_v28 = vmin.u32 %v1391_v49, %v2082_v50  ;;  %v1437_v9 = vor.u32 8388608, %v1436_v52  ;;  %vm1440_vm5 = vcmp.gt.s32.totalorder %v1439_v62, 0  ;;  %v1190_v10 = vshll.u32 %v2046_v59, %v1188_v60 }
 0x16b   :  { %v1191_v51 = vshrl.u32 %v1173_v2, %v1189_v53  ;;  %v1194_v12 = vadd.s32 127, %v1193_v1  ;;  %vm1278_vm6 = vc.u32 %v2092_v55, %v2077_v44  ;;  %vm2105_vm7 = vcmp.le.f32.partialorder %v1117_v27, 0.7853982 }
 0x16c   :  { %v1393_v45 = vclz %v1574_v28  ;;  %v1280_v11 = vsel %vm1278_vm6, %v1279_v6, %v2078_v46  ;;  %v1441_v13 = vsel %vm1440_vm5, %v1439_v62, 0  ;;  %v1206_v59 = vsel %vm2105_vm7, 0, %v1204_v48 }
 0x16d   :  { %v1192_v15 = vor.u32 %v1191_v51, %v1190_v10  ;;  %v1195_v41 = vshll.u32 %v1194_v12, 23  ;;  %v1281_v57 = vadd.s32 %v1280_v11, %v1276_v8  ;;  %v1381_v16 = vadd.s32 %v2016_v32, %v2022_v35 }
 0x16e   :  { %v1575_v18 = vadd.s32 4294967294, %v1393_v45  ;;  %v2116_v27 = vsel %vm1327_vm3, %v1411_v4, %v1387_v17  ;;  %v1443_v19 = vand.u32 31, %v1441_v13  ;;  %v2118_v23 = vshrl.u32 %v1441_v13, 5 }
 0x16f   :  { %v1196_v20 = vor.u32 4788187, %v1195_v41  ;;  %v1282_v21 = vadd.s32 536870912, %v1281_v57  ;;  %v2120_v24 = vshll.u32 %v1437_v9, 8  ;;  %v2123_v26 = vadd.s32 %v2077_v44, %v2092_v55 }
 0x170   :  { %vm1576_vm8 = vcmp.lt.s32.totalorder %v1575_v18, 0  ;;  %v1444_v30 = vsub.s32 32, %v1443_v19  ;;  %v2125_v31 = vadd.s32 3, %v1206_v59  ;;  %v1199_v35 = vcvt.s32.f32 %v1192_v15 }
 0x171   :  { %v1197_v32 = vand.u32 2147483647, %v1196_v20  ;;  %v1396_v33 = vsel %vm1576_vm8, 0, %v1575_v18  ;;  %v2127_v34 = vshrl.u32 %v1282_v21, 30  ;;  %v1446_v43 = vshll.u32 %v1774_v61, %v1443_v19 }
 0x172   :  { %v1397_v17 = vsub.s32 32, %v1396_v33  ;;  %v1401_v39 = vsub.s32 4294967266, %v1396_v33  ;;  %v1449_v46 = vshll.u32 %v1775_v63, %v1443_v19  ;;  %v1398_v47 = vshll.u32 %v2082_v50, %v1396_v33 }
 0x173   :  { %v1200_v2 = vmul.f32 %v1199_v35, %v1197_v32  ;;  %v1284_v44 = vshll.u32 %v2127_v34, 30  ;;  %v1447_v52 = vshrl.u32 %v1775_v63, %v1444_v30  ;;  %vm1461_vm9 = vcmp.lt.s32.totalorder %v2118_v23, 1 }
 0x174   :  { %v1399_v58 = vshrl.u32 %v1381_v16, %v1397_v17  ;;  %v1402_v54 = vadd.s32 127, %v1401_v39  ;;  %v1450_v55 = vshrl.u32 %v1776_v3, %v1444_v30  ;;  %v1453_v60 = vshrl.u32 %v1777_v5, %v1444_v30 }
 0x175   :  { %v1201_v48 = vxor.u32 2147483648, %v1200_v2  ;;  %v2137_v49 = vsub.s32 %v1281_v57, %v1284_v44  ;;  %v1445_v62 = vshrl.u32 %v1774_v61, %v1444_v30  ;;  %v1452_v53 = vshll.u32 %v1776_v3, %v1443_v19 }
 0x176   :  { %v1400_v50 = vor.u32 %v1399_v58, %v1398_v47  ;;  %v1403_v1 = vshll.u32 %v1402_v54, 23  ;;  %v1448_v4 = vor.u32 %v1447_v52, %v1446_v43  ;;  %v1451_v6 = vor.u32 %v1450_v55, %v1449_v46 }
 0x177   :  { %v1202_v63 = vsel %vm1119_vm1, %v1201_v48, %v1200_v2  ;;  %v1287_v28 = vsub.s32 0, %v2137_v49  ;;  %v1455_v8 = vshll.u32 %v1777_v5, %v1443_v19  ;;  %v1456_v9 = vshrl.u32 %v1778_v7, %v1444_v30 }
 0x178   :  { %v1205_v10 = vsel %vm2105_vm7, %v1921_v0, %v1202_v63  ;;  %vm2151_vm10 = vcmp.le.f32.partialorder %v1325_v29, 0.7853982  ;;  %v1404_v3 = vor.u32 4788187, %v1403_v1  ;;  %v1454_v51 = vor.u32 %v1453_v60, %v1452_v53 }
 0x179   :  { %v1458_v12 = vshll.u32 %v1778_v7, %v1443_v19  ;;  %1681 = vcosq.f32 %v1205_v10  ;;  %v1570_v45 = vmin.u32 %v1287_v28, %v2137_v49  ;;  %v1457_v5 = vor.u32 %v1456_v9, %v1455_v8 }
 0x17a   :  { %v1459_v11 = vshrl.u32 %v1779_v14, %v1444_v30  ;;  %1683 = vsinq.f32 %v1205_v10  ;;  %v1405_v13 = vand.u32 2147483647, %v1404_v3  ;;  %v1407_v40 = vcvt.s32.f32 %v1400_v50 }
 0x17b   :  { %vm1462_vm11 = vcmp.lt.s32.totalorder %v2118_v23, 2  ;;  %v1289_v15 = vclz %v1570_v45  ;;  %vm1463_vm12 = vcmp.lt.s32.totalorder %v2118_v23, 3  ;;  %vm1464_vm13 = vcmp.lt.s32.totalorder %v2118_v23, 4 }
 0x17c   :  { %v1460_v29 = vor.u32 %v1459_v11, %v1458_v12  ;;  %v1408_v41 = vmul.f32 %v1407_v40, %v1405_v13  ;;  %v1466_v57 = vsel %vm1464_vm13, %v1454_v51, 2102212464  ;;  %v1469_v7 = vsel %vm1461_vm9, %v1448_v4, %v1451_v6 }
 0x17d   :  { %v1470_v59 = vsel %vm1464_vm13, %v1457_v5, 920167782  ;;  %v1571_v16 = vadd.s32 4294967294, %v1289_v15  ;;  %v1465_v14 = vsel %vm1461_vm9, %v1445_v62, %v1448_v4  ;;  %v1473_v19 = vsel %vm1461_vm9, %v1451_v6, %v1454_v51 }
 0x17e   :  { %v1471_v18 = vsel %vm1463_vm12, %v1454_v51, %v1470_v59  ;;  %v1409_v20 = vxor.u32 2147483648, %v1408_v41  ;;  %v1467_v21 = vsel %vm1463_vm12, %v1451_v6, %v1466_v57  ;;  %v1474_v32 = vsel %vm1464_vm13, %v1460_v29, 1326507024 }
 0x17f   :  { %v1472_v30 = vsel %vm1462_vm11, %v1469_v7, %v1471_v18  ;;  %vm1572_vm14 = vcmp.lt.s32.totalorder %v1571_v16, 0  ;;  %v1475_v35 = vsel %vm1463_vm12, %v1457_v5, %v1474_v32  ;;  %v1211_v2 = vand.u32 3, %v2125_v31 }
 0x180   :  { %v2170_v33 = vmul.u32.u64.low %v2120_v24, %v1472_v30  ;;  %v2171_v17 = vmul.u32.u64.high %v2120_v24, %v1472_v30, %v2170_v33  ;;  %v1410_v39 = vsel %vm1327_vm3, %v1409_v20, %v1408_v41  ;;  %v1292_v43 = vsel %vm1572_vm14, 0, %v1571_v16 }
 0x181   :  { %v1476_v46 = vsel %vm1462_vm11, %v1473_v19, %v1475_v35  ;;  %v1413_v47 = vsel %vm2151_vm10, %v1923_v22, %v1410_v39  ;;  %v1293_v44 = vsub.s32 32, %v1292_v43  ;;  %v1297_v52 = vsub.s32 4294967266, %v1292_v43 }
 0x182   :  { %v1468_v58 = vsel %vm1462_vm11, %v1465_v14, %v1467_v21  ;;  %1685 = vcosq.f32 %v1413_v47  ;;  %v1294_v54 = vshll.u32 %v2137_v49, %v1292_v43  ;;  %v1487_v53 = vadd.s32 1, %v2171_v17 }
 0x183   :  { %v2186_v55 = vmul.u32.u64.low %v2120_v24, %v1476_v46  ;;  %v2187_v60 = vmul.u32.u64.high %v2120_v24, %v1476_v46, %v2186_v55  ;;  %v1682_v48 = vpop.eup %1681  ;;  %1687 = vsinq.f32 %v1413_v47  ;;  %v1295_v31 = vshrl.u32 %v2123_v26, %v1293_v44 }
 0x184   :  { %v1298_v62 = vadd.s32 127, %v1297_v52  ;;  %v1684_v50 = vpop.eup %1683  ;;  %v1063_v1 = vadd.s32 256, %v1939_v38  ;;  %vm2194_vm15 = vcmp.eq.s32.totalorder %v1069_v42, 31  ;;  %vm1216_vm0 = vcmp.eq.s32.totalorder %v1211_v2, 2 }
 0x185   :  { %v1217_v49 = vxor.u32 2147483648, %v1682_v48  ;;  %v1296_v4 = vor.u32 %v1295_v31, %v1294_v54  ;;  %v1214_v63 = vxor.u32 2147483648, %v1684_v50  ;;  %v1414_v26 = vsel %vm2151_vm10, 0, %v2116_v27 }
 0x186   :  { %v1299_v6 = vshll.u32 %v1298_v62, 23  ;;  %v1484_v28 = vmul.u32 %v2120_v24, %v1468_v58  ;;  %vm1486_vm1 = vc.u32 %v2187_v60, %v2170_v33  ;;  %vm1213_vm2 = vcmp.eq.s32.totalorder %v1211_v2, 0 }
 0x187   :  { %v1218_v8 = vsel %vm1216_vm0, %v1217_v49, %v1684_v50  ;;  %v1488_v9 = vsel %vm1486_vm1, %v1487_v53, %v2171_v17  ;;  %vm1212_vm3 = vcmp.lt.s32.totalorder %v1211_v2, 2  ;;  %v1215_v10 = vsel %vm1213_vm2, %v1682_v48, %v1214_v63 }
 0x188   :  { %v1300_v42 = vor.u32 4788187, %v1299_v6  ;;  %v1489_v3 = vadd.s32 %v1488_v9, %v1484_v28  ;;  %vm1209_vm4 = vweird.f32 %v1921_v0  ;;  %v1219_v51 = vsel %vm1212_vm3, %v1215_v10, %v1218_v8 }
 0x189   :  { %v1418_v12 = vadd.s32 3, %v1414_v26  ;;  %v1303_v61 = vcvt.s32.f32 %v1296_v4  ;;  %v1220_v27 = vsel %vm1209_vm4, nan, %v1219_v51  ;;  %v1307_v24 = vsub.s32 4, %v2127_v34 }
 0x18a   :  { %v1301_v45 = vand.u32 2147483647, %v1300_v42  ;;  %v1490_v5 = vadd.s32 536870912, %v1489_v3  ;;  %v1083_v13 = vand.u32 31, %v1063_v1  ;;  %v1541_v15 = vsel %vm2194_vm15, %v1921_v0, %v1220_v27 }
 0x18b   :  { %v1419_v40 = vand.u32 3, %v1418_v12  ;;  %1545 = vst [vmem:[#allocation7] sm:$0xff] %v1541_v15  ;;  %vm1223_vm5 = vcmp.lt.s32.totalorder %v1925_v25, 0  ;;  %vm2217_vm6 = vcmp.le.f32.partialorder %v1221_v36, 0.7853982  ;;  %vm1417_vm11 = vweird.f32 %v1923_v22 }
 0x18c   :  { %v1304_v11 = vmul.f32 %v1303_v61, %v1301_v45  ;;  %v1686_v29 = vpop.eup %1685  ;;  %v2210_v41 = vshrl.u32 %v1490_v5, 30  ;;  %v1308_v59 = vsel %vm1223_vm5, %v1307_v24, %v2127_v34  ;;  %vm2221_vm7 = vcmp.eq.s32.totalorder %v1083_v13, 31 }
 0x18d   :  { %v1688_v57 = vpop.eup %1687  ;;  %v1425_v18 = vxor.u32 2147483648, %v1686_v29  ;;  %vm1421_vm8 = vcmp.eq.s32.totalorder %v1419_v40, 0  ;;  %vm1424_vm9 = vcmp.eq.s32.totalorder %v1419_v40, 2  ;;  %v1310_v36 = vsel %vm2217_vm6, 0, %v1308_v59 }
 0x18e   :  { %v1305_v7 = vxor.u32 2147483648, %v1304_v11  ;;  %v1492_v16 = vshll.u32 %v2210_v41, 30  ;;  %v1422_v14 = vxor.u32 2147483648, %v1688_v57  ;;  %vm1420_vm10 = vcmp.lt.s32.totalorder %v1419_v40, 2 }
 0x18f   :  { %v1426_v32 = vsel %vm1424_vm9, %v1425_v18, %v1688_v57  ;;  %v1314_v2 = vadd.s32 3, %v1310_v36  ;;  %v1062_v44 = vadd.s32 128, %v1939_v38  ;;  %v1485_v62 = vadd.s32 %v2170_v33, %v2187_v60 }
 0x190   :  { %v1306_v0 = vsel %vm1223_vm5, %v1305_v7, %v1304_v11  ;;  %v1493_v21 = vsub.s32 %v1489_v3, %v1492_v16  ;;  %v1423_v30 = vsel %vm1421_vm8, %v1686_v29, %v1422_v14  ;;  %vm1313_vm1 = vweird.f32 %v1925_v25 }
 0x191   :  { %v1309_v34 = vsel %vm2217_vm6, %v1925_v25, %v1306_v0  ;;  %v1427_v17 = vsel %vm1420_vm10, %v1423_v30, %v1426_v32  ;;  %v1315_v58 = vand.u32 3, %v1314_v2  ;;  %v1076_v48 = vand.u32 31, %v1062_v44 }
 0x192   :  { %1689 = vcosq.f32 %v1309_v34  ;;  %v1495_v35 = vsub.s32 0, %v1493_v21  ;;  %v1428_v39 = vsel %vm1417_vm11, nan, %v1427_v17  ;;  %v1515_v51 = vsub.s32 4, %v2210_v41 }
 0x193   :  { %1691 = vsinq.f32 %v1309_v34  ;;  %v1543_v46 = vsel %vm2221_vm7, %v1923_v22, %v1428_v39  ;;  %vm1317_vm13 = vcmp.eq.s32.totalorder %v1315_v58, 0  ;;  %vm1320_vm14 = vcmp.eq.s32.totalorder %v1315_v58, 2 }
 0x194   :  { %v1578_v43 = vmin.u32 %v1495_v35, %v1493_v21  ;;  %1547 = vst [vmem:[#allocation7 + $0x10] sm:$0xff] %v1543_v46  ;;  %vm1114_vm15 = vcmp.eq.s32.totalorder %v1076_v48, 31  ;;  %vm1316_vm0 = vcmp.lt.s32.totalorder %v1315_v58, 2  ;;  %vm1431_vm2 = vcmp.lt.s32.totalorder %v1937_v37, 0 }
 0x195   :  { %vm1430_vm3 = vcmp.le.f32.partialorder %v1429_v56, 0.7853982  ;;  %v1516_v61 = vsel %vm1431_vm2, %v1515_v51, %v2210_v41  ;;  %v1064_v5 = vadd.s32 384, %v1939_v38  ;;  %vm1521_vm8 = vweird.f32 %v1937_v37 }
 0x196   :  { %v1497_v47 = vclz %v1578_v43 }
 0x197   :  { %v1090_v40 = vand.u32 31, %v1064_v5 }
 0x198   :  { %v1579_v52 = vadd.s32 4294967294, %v1497_v47 }
 0x199   :  { %vm1116_vm6 = vcmp.eq.s32.totalorder %v1090_v40, 31 }
 0x19a   :  { %vm1580_vm12 = vcmp.lt.s32.totalorder %v1579_v52, 0 }
 0x19b   :  { %v1500_v55 = vsel %vm1580_vm12, 0, %v1579_v52 }
 0x19c   :  { %v1690_v54 = vpop.eup %1689  ;;  %v1501_v53 = vsub.s32 32, %v1500_v55  ;;  %v1505_v50 = vsub.s32 4294967266, %v1500_v55  ;;  %v1502_v23 = vshll.u32 %v1493_v21, %v1500_v55 }
 0x19d   :  { %v1692_v31 = vpop.eup %1691  ;;  %v1321_v1 = vxor.u32 2147483648, %v1690_v54 }
 0x19e   :  { %v1318_v22 = vxor.u32 2147483648, %v1692_v31  ;;  %v1503_v49 = vshrl.u32 %v1485_v62, %v1501_v53  ;;  %v1506_v4 = vadd.s32 127, %v1505_v50 }
 0x19f   :  { %v1322_v6 = vsel %vm1320_vm14, %v1321_v1, %v1692_v31 }
 0x1a0   :  { %v1319_v63 = vsel %vm1317_vm13, %v1690_v54, %v1318_v22  ;;  %v1504_v26 = vor.u32 %v1503_v49, %v1502_v23  ;;  %v1507_v28 = vshll.u32 %v1506_v4, 23 }
 0x1a1   :  { %v1323_v8 = vsel %vm1316_vm0, %v1319_v63, %v1322_v6 }
 0x1a2   :  { %v1324_v42 = vsel %vm1313_vm1, nan, %v1323_v8  ;;  %v1508_v33 = vor.u32 4788187, %v1507_v28  ;;  %v1511_v10 = vcvt.s32.f32 %v1504_v26 }
 0x1a3   :  { %v1542_v60 = vsel %vm1114_vm15, %v1925_v25, %v1324_v42  ;;  %v1518_v25 = vsel %vm1430_vm3, 0, %v1516_v61 }
 0x1a4   :  { %1546 = vst [vmem:[#allocation7 + $0x8] sm:$0xff] %v1542_v60  ;;  %v1509_v9 = vand.u32 2147483647, %v1508_v33  ;;  %v1522_v24 = vadd.s32 3, %v1518_v25 }
 0x1a6   :  { %v1512_v3 = vmul.f32 %v1511_v10, %v1509_v9  ;;  %v1523_v11 = vand.u32 3, %v1522_v24 }
 0x1a8   :  { %v1513_v12 = vxor.u32 2147483648, %v1512_v3  ;;  %vm1528_vm4 = vcmp.eq.s32.totalorder %v1523_v11, 2  ;;  %vm1525_vm5 = vcmp.eq.s32.totalorder %v1523_v11, 0  ;;  %vm1524_vm7 = vcmp.lt.s32.totalorder %v1523_v11, 2 }
 0x1aa   :  { %v1514_v45 = vsel %vm1431_vm2, %v1513_v12, %v1512_v3 }
 0x1ab   :  { %v1517_v27 = vsel %vm1430_vm3, %v1937_v37, %v1514_v45 }
 0x1ac   :  { %1693 = vcosq.f32 %v1517_v27 }
 0x1ad   :  { %1695 = vsinq.f32 %v1517_v27 }
 0x1b6   :  { %v1694_v13 = vpop.eup %1693 }
 0x1b7   :  { %v1696_v15 = vpop.eup %1695  ;;  %v1529_v29 = vxor.u32 2147483648, %v1694_v13 }
 0x1b8   :  { %v1526_v57 = vxor.u32 2147483648, %v1696_v15 }
 0x1b9   :  { %v1530_v56 = vsel %vm1528_vm4, %v1529_v29, %v1696_v15 }
 0x1ba   :  { %v1527_v41 = vsel %vm1525_vm5, %v1694_v13, %v1526_v57 }
 0x1bb   :  { %v1531_v7 = vsel %vm1524_vm7, %v1527_v41, %v1530_v56 }
 0x1bc   :  { %v1532_v59 = vsel %vm1521_vm8, nan, %v1531_v7 }
 0x1bd   :  { %v1544_v38 = vsel %vm1116_vm6, %v1937_v37, %v1532_v59 }
 0x1be   :  { %1548 = vst [vmem:[#allocation7 + $0x18] sm:$0xff] %v1544_v38 }
 0x1bf   :  { %1752 = shalt.err (!%p1749_p6)
}
 0x1c0   :  { %s1753_s15 = scalar_lea.hbm %s2263_s3, 512 }
 0x1c1   :  { %p1754_p7 = scmp.ne.s32.totalorder %s2263_s3, %s1753_s15  ;;  %p1757_p8 = scmp.lt.u32.totalorder %s1753_s15, %s2263_s3 }
 0x1c3   :  { %p1759_p9 = pnand %p1757_p8, %p1754_p7 }
 0x1c5   :  { %1762 = shalt.err (!%p1759_p9)
}
 0x1c6   :  { %1558 = dma.vmem_to_hbm [thread:$0]  %s1556_s11, 512, %s2263_s3, [#allocation4]  }
 0x1c7   :  { %1767 = dma.done.wait [#allocation4], 512  }
 0x1c8   :  { %1768 = vsyncadd [#allocation4], 4294966784 }
 0x1c9   :  { %1562 = vsyncpa [#allocation3], 1 }
 0x1ca   :  { %1563 = vsyncpa [#allocation6], 1 }
 0x1cb   :  { %1564 = vsyncpa [#allocation4], 1 }

</bundles_post_ra>
